<compile_context>
chip_gen: v6e
topology: v6e:2x2x1
jax: 0.10.0
libtpu: 0.0.40
codegen_flags: <defaults>
</compile_context>

<pallas_src>
import math

import jax
import jax.numpy as jnp
from jax.experimental import pallas as pl
from jax.experimental.pallas import tpu as pltpu


_GELU_C = math.sqrt(2.0 / math.pi)
_GELU_A = _GELU_C * 0.044715


def _round_up(x, m):
    return ((x + m - 1) // m) * m


def _cdiv(a, b):
    return -(-a // b)


def _vmem_capacity_bytes():
    try:
        return int(pltpu.get_tpu_info().vmem_capacity_bytes)
    except Exception:
        return 64 << 20  # conservative default (v7x per-TensorCore)


def _block_spec(shape, index_map, *, single_buffer=False):
    """BlockSpec, optionally single-buffered (constant-index inputs)."""
    if single_buffer and hasattr(pl, "Buffered"):
        try:
            return pl.BlockSpec(shape, index_map, pipeline_mode=pl.Buffered(1))
        except TypeError:
            pass
    return pl.BlockSpec(shape, index_map)


def _ffn_kernel(x_ref, w1_ref, b1_ref, w2_ref, b2_ref, o_ref, acc_ref):
    # grid = (M tiles, H chunks); H (reduction) is the last, "arbitrary" axis.
    # x_ref : (tm, E_pad)  original dtype        w1_ref: (E_pad, th) compute dtype
    # b1_ref: (1, th) f32                        w2_ref: (th, E_pad) compute dtype
    # b2_ref: (1, E_pad) f32                     o_ref : (tm, E_pad) out dtype
    # acc_ref: (tm, E_pad) f32 scratch accumulator (resident across H chunks)
    j = pl.program_id(1)

    @pl.when(j == 0)
    def _():
        acc_ref[...] = jnp.zeros_like(acc_ref)

    # Cast x in-kernel: saves a separate XLA pad/cast pass over x in HBM.
    x = x_ref[...].astype(w1_ref.dtype)

    # First linear, this H chunk: (tm, E) @ (E, th) -> f32 accumulate + f32 bias.
    h = jnp.dot(x, w1_ref[...], preferred_element_type=jnp.float32) + b1_ref[...]

    # GELU, tanh approximation (matches the module's GELU formula), trimmed chain.
    u = h * h
    t = jnp.tanh(h * (_GELU_C + _GELU_A * u))   # EUP slot
    hh = 0.5 * h
    g = hh + hh * t

    # Second linear partial product: (tm, th) @ (th, E) accumulated in f32.
    acc_ref[...] += jnp.dot(
        g.astype(w2_ref.dtype), w2_ref[...], preferred_element_type=jnp.float32
    )

    @pl.when(j == pl.num_programs(1) - 1)
    def _():
        o_ref[...] = (acc_ref[...] + b2_ref[...]).astype(o_ref.dtype)


def prepare_ffn_params(w1, b1, w2, b2, *, compute_dtype=jnp.bfloat16):
    """Pad to lane-dense (128-aligned) shapes and cast ONCE, at init time."""
    E, H = w1.shape
    E_pad = _round_up(E, 128)
    H_pad = _round_up(H, 128)
    w1p = jnp.pad(w1, ((0, E_pad - E), (0, H_pad - H))).astype(compute_dtype)
    w2p = jnp.pad(w2, ((0, H_pad - H), (0, E_pad - E))).astype(compute_dtype)
    b1p = jnp.pad(jnp.reshape(b1, (1, H)), ((0, 0), (0, H_pad - H))).astype(jnp.float32)
    b2p = jnp.pad(jnp.reshape(b2, (1, E)), ((0, 0), (0, E_pad - E))).astype(jnp.float32)
    return {
        "w1": w1p, "b1": b1p, "w2": w2p, "b2": b2p,
        "E": E, "H": H, "E_pad": E_pad, "H_pad": H_pad,
        "compute_dtype": jnp.dtype(compute_dtype),
    }


def feed_forward(x, params, *, out_dtype=None):
    """x: (B, S, E); params from prepare_ffn_params. Returns (B, S, E)."""
    B, S, E = x.shape
    assert E == params["E"], "embedding dim mismatch"
    E_pad, H_pad = params["E_pad"], params["H_pad"]
    c_bytes = params["compute_dtype"].itemsize
    x_bytes = jnp.dtype(x.dtype).itemsize
    out_dtype = jnp.dtype(x.dtype if out_dtype is None else out_dtype)
    o_bytes = out_dtype.itemsize
    M = B * S

    # --- Generation-aware VMEM budget ------------------------------------------------
    cap = _vmem_capacity_bytes()
    big_vmem = cap >= (96 << 20)          # v5e/v6e: 128 MiB; v7x: 64 MiB per TC
    vmem_limit = (100 << 20) if big_vmem else min(max(cap - (8 << 20), 16 << 20), 56 << 20)

    # --- M tiling: >=2 tiles when possible (pipelining + megacore), minimal padding --
    tm_cap = 512 if big_vmem else 256
    per_row = E_pad * (2 * x_bytes + 2 * o_bytes + 4)   # x, out (double-buffered) + acc
    while tm_cap > 64 and tm_cap * per_row > vmem_limit // 3:
        tm_cap //= 2
    if M <= 8:
        tm = _round_up(max(M, 1), 8)
    else:
        n_m = max(2, _cdiv(M, tm_cap))
        tm = min(_round_up(_cdiv(M, n_m), 8), tm_cap)
    n_m = _cdiv(M, tm)
    M_pad = n_m * tm

    # --- H chunking: largest 128-aligned divisor of H_pad whose working set fits -----
    fixed_bytes = tm * per_row + 2 * E_pad * 4          # activations + b2
    budget = max(vmem_limit - fixed_bytes - (4 << 20), 2 << 20)

    def _chunk_cost(th, nbuf):
        weights = 2 * E_pad * th * c_bytes * nbuf + th * 4 * nbuf   # w1+w2 chunks, b1
        temps = 3 * tm * th * 4                                     # h/u/g f32 temps
        return weights + temps

    th = 128
    for k in range(1, H_pad // 128 + 1):
        if H_pad % k:
            continue
        cand = H_pad // k
        if cand % 128:
            continue
        if _chunk_cost(cand, 1 if k == 1 else 2) <= budget:
            th = cand
            break
    n_h = H_pad // th
    weights_resident = n_h == 1

    # --- Wrapper-side x prep: pad only if needed, never cast here --------------------
    x2d = x.reshape(M, E)
    if M_pad != M or E_pad != E:
        x2d = jnp.pad(x2d, ((0, M_pad - M), (0, E_pad - E)))

    weight_bytes = 2 * E_pad * H_pad * c_bytes
    cost = pl.CostEstimate(
        flops=4 * M_pad * E_pad * H_pad,
        transcendentals=M_pad * H_pad,
        bytes_accessed=(
            M_pad * E_pad * x_bytes
            + M_pad * E_pad * o_bytes
            + (weight_bytes if weights_resident else n_m * weight_bytes)
            + (H_pad + E_pad) * 4
        ),
    )

    out2d = pl.pallas_call(
        _ffn_kernel,
        out_shape=jax.ShapeDtypeStruct((M_pad, E_pad), out_dtype),
        grid_spec=pltpu.PrefetchScalarGridSpec(
            num_scalar_prefetch=0,
            grid=(n_m, n_h),
            in_specs=[
                pl.BlockSpec((tm, E_pad), lambda i, j: (i, 0)),        # x (per M tile)
                _block_spec((E_pad, th), lambda i, j: (0, j),
                            single_buffer=weights_resident),           # w1 chunk
                _block_spec((1, th), lambda i, j: (0, j),
                            single_buffer=weights_resident),           # b1 chunk
                _block_spec((th, E_pad), lambda i, j: (j, 0),
                            single_buffer=weights_resident),           # w2 chunk
                _block_spec((1, E_pad), lambda i, j: (0, 0),
                            single_buffer=True),                       # b2 (constant)
            ],
            out_specs=pl.BlockSpec((tm, E_pad), lambda i, j: (i, 0)),
            scratch_shapes=[pltpu.VMEM((tm, E_pad), jnp.float32)],
        ),
        compiler_params=pltpu.CompilerParams(
            dimension_semantics=("parallel", "arbitrary"),
            vmem_limit_bytes=int(vmem_limit),
        ),
        cost_estimate=cost,
    )(x2d, params["w1"], params["b1"], params["w2"], params["b2"])

    return out2d[:M, :E].reshape(B, S, E)


def _reference(x, w1, b1, w2, b2):
    h = jnp.einsum("bse,eh->bsh", x, w1) + b1
    g = 0.5 * h * (1.0 + jnp.tanh(jnp.float32(_GELU_C) * (h + 0.044715 * h**3)))
    return jnp.einsum("bsh,he->bse", g, w2) + b2


if __name__ == "__main__":
    # Small config consistent with the module: n_embd=32 -> hidden = 4*32 = 128.
    B, S, E = 2, 8, 32
    H = 4 * E

    key = jax.random.PRNGKey(0)
    kx, k1, k2, k3, k4 = jax.random.split(key, 5)

    # Deterministic init mimicking nn.Linear's uniform(-1/sqrt(fan_in), 1/sqrt(fan_in)).
    bound1 = 1.0 / math.sqrt(E)
    bound2 = 1.0 / math.sqrt(H)
    w1 = jax.random.uniform(k1, (E, H), jnp.float32, -bound1, bound1)
    b1 = jax.random.uniform(k2, (1, H), jnp.float32, -bound1, bound1)
    w2 = jax.random.uniform(k3, (H, E), jnp.float32, -bound2, bound2)
    b2 = jax.random.uniform(k4, (1, E), jnp.float32, -bound2, bound2)

    x = jax.random.normal(kx, (B, S, E), jnp.float32)

    ref = _reference(x, w1, b1, w2, b2)

    # Exact-semantics path: f32 matmuls, tight tolerance.
    params_f32 = prepare_ffn_params(w1, b1, w2, b2, compute_dtype=jnp.float32)
    out_f32 = jax.block_until_ready(feed_forward(x, params_f32))
    assert out_f32.shape == (B, S, E)
    assert jnp.allclose(out_f32, ref, atol=1e-5, rtol=1e-5), "f32 path mismatch"

    # Fast path: bf16 MXU inputs (cast in-kernel) with f32 accumulation.
    params_bf16 = prepare_ffn_params(w1, b1, w2, b2, compute_dtype=jnp.bfloat16)
    out_bf16 = jax.block_until_ready(feed_forward(x, params_bf16))
    assert out_bf16.shape == (B, S, E)
    assert jnp.allclose(out_bf16, ref, atol=5e-2, rtol=5e-2), "bf16 path mismatch"

    print("KERNEL_OK")
</pallas_src>

<mosaic_0001>
module attributes {stable_mosaic.version = 11 : i64} {
  func.func @_ffn_kernel(%arg0: i32, %arg1: i32, %arg2: memref<8x128xf32, #tpu.memory_space<vmem>>, %arg3: memref<128x128xf32, #tpu.memory_space<vmem>>, %arg4: memref<1x128xf32, #tpu.memory_space<vmem>>, %arg5: memref<128x128xf32, #tpu.memory_space<vmem>>, %arg6: memref<1x128xf32, #tpu.memory_space<vmem>>, %arg7: memref<8x128xf32, #tpu.memory_space<vmem>>, %arg8: memref<8x128xf32, #tpu.memory_space<vmem>>) attributes {dimension_semantics = [#tpu.dimension_semantics<parallel>, #tpu.dimension_semantics<arbitrary>], iteration_bounds = array<i64: 2, 1>, scalar_prefetch = 0 : i64, scratch_operands = 1 : i64, tpu.core_type = #tpu.core_type<tc>, window_params = [{transform_indices = @transform_0, window_bounds = array<i64: 8, 128>}, {pipeline_mode = #tpu.pipeline_mode<synchronous>, transform_indices = @transform_1, window_bounds = array<i64: 128, 128>}, {pipeline_mode = #tpu.pipeline_mode<synchronous>, transform_indices = @transform_2, window_bounds = array<i64: 1, 128>}, {pipeline_mode = #tpu.pipeline_mode<synchronous>, transform_indices = @transform_3, window_bounds = array<i64: 128, 128>}, {pipeline_mode = #tpu.pipeline_mode<synchronous>, transform_indices = @transform_4, window_bounds = array<i64: 1, 128>}, {transform_indices = @transform_5, window_bounds = array<i64: 8, 128>}]} {
    %c0_i32 = arith.constant 0 : i32
    %0 = arith.cmpi eq, %arg1, %c0_i32 : i32
    %1 = arith.extui %0 : i1 to i32
    %c0_i32_0 = arith.constant 0 : i32
    %2 = arith.cmpi ne, %1, %c0_i32_0 : i32
    scf.if %2 {
      %cst_18 = arith.constant 0.000000e+00 : f32
      %28 = vector.broadcast %cst_18 : f32 to vector<8x128xf32>
      %c0_19 = arith.constant 0 : index
      %c0_20 = arith.constant 0 : index
      %29 = vector.load %arg8[%c0_19, %c0_20] : memref<8x128xf32, #tpu.memory_space<vmem>>, vector<8x128xf32>
      tpu.vector_store %arg8[%c0_19, %c0_20], %28 {strides = array<i32>} : memref<8x128xf32, #tpu.memory_space<vmem>>, vector<8x128xf32>,
    } else {
    }
    %c0 = arith.constant 0 : index
    %c0_1 = arith.constant 0 : index
    %3 = vector.load %arg2[%c0, %c0_1] : memref<8x128xf32, #tpu.memory_space<vmem>>, vector<8x128xf32>
    %c0_2 = arith.constant 0 : index
    %c0_3 = arith.constant 0 : index
    %4 = vector.load %arg3[%c0_2, %c0_3] : memref<128x128xf32, #tpu.memory_space<vmem>>, vector<128x128xf32>
    %cst = arith.constant dense<0.000000e+00> : vector<8x128xf32>
    %5 = tpu.matmul %3, %4, %cst {dimension_numbers = #tpu.dot_dimension_numbers<[1], [0], [0], [1], [0, 0, 1, 1], [], []>} : vector<8x128xf32>, vector<128x128xf32>, vector<8x128xf32> -> vector<8x128xf32>
    %c0_4 = arith.constant 0 : index
    %c0_5 = arith.constant 0 : index
    %6 = vector.load %arg4[%c0_4, %c0_5] : memref<1x128xf32, #tpu.memory_space<vmem>>, vector<1x128xf32>
    %7 = vector.broadcast %6 : vector<1x128xf32> to vector<8x128xf32>
    %8 = arith.addf %5, %7 : vector<8x128xf32>
    %9 = arith.mulf %8, %8 : vector<8x128xf32>
    %cst_6 = arith.constant 0.0356774069 : f32
    %10 = vector.broadcast %cst_6 : f32 to vector<8x128xf32>
    %11 = arith.mulf %10, %9 : vector<8x128xf32>
    %cst_7 = arith.constant 0.797884583 : f32
    %12 = vector.broadcast %cst_7 : f32 to vector<8x128xf32>
    %13 = arith.addf %12, %11 : vector<8x128xf32>
    %14 = arith.mulf %8, %13 : vector<8x128xf32>
    %15 = math.tanh %14 : vector<8x128xf32>
    %cst_8 = arith.constant 5.000000e-01 : f32
    %16 = vector.broadcast %cst_8 : f32 to vector<8x128xf32>
    %17 = arith.mulf %16, %8 : vector<8x128xf32>
    %18 = arith.mulf %17, %15 : vector<8x128xf32>
    %19 = arith.addf %17, %18 : vector<8x128xf32>
    %c0_9 = arith.constant 0 : index
    %c0_10 = arith.constant 0 : index
    %20 = vector.load %arg8[%c0_9, %c0_10] : memref<8x128xf32, #tpu.memory_space<vmem>>, vector<8x128xf32>
    %c0_11 = arith.constant 0 : index
    %c0_12 = arith.constant 0 : index
    %21 = vector.load %arg5[%c0_11, %c0_12] : memref<128x128xf32, #tpu.memory_space<vmem>>, vector<128x128xf32>
    %cst_13 = arith.constant dense<0.000000e+00> : vector<8x128xf32>
    %22 = tpu.matmul %19, %21, %cst_13 {dimension_numbers = #tpu.dot_dimension_numbers<[1], [0], [0], [1], [0, 0, 1, 1], [], []>} : vector<8x128xf32>, vector<128x128xf32>, vector<8x128xf32> -> vector<8x128xf32>
    %23 = arith.addf %20, %22 : vector<8x128xf32>
    %c0_14 = arith.constant 0 : index
    %c0_15 = arith.constant 0 : index
    %24 = vector.load %arg8[%c0_14, %c0_15] : memref<8x128xf32, #tpu.memory_space<vmem>>, vector<8x128xf32>
    tpu.vector_store %arg8[%c0_14, %c0_15], %23 {strides = array<i32>} : memref<8x128xf32, #tpu.memory_space<vmem>>, vector<8x128xf32>,
    %c0_i32_16 = arith.constant 0 : i32
    %25 = arith.cmpi eq, %arg1, %c0_i32_16 : i32
    %26 = arith.extui %25 : i1 to i32
    %c0_i32_17 = arith.constant 0 : i32
    %27 = arith.cmpi ne, %26, %c0_i32_17 : i32
    scf.if %27 {
      %c0_18 = arith.constant 0 : index
      %c0_19 = arith.constant 0 : index
      %28 = vector.load %arg8[%c0_18, %c0_19] : memref<8x128xf32, #tpu.memory_space<vmem>>, vector<8x128xf32>
      %c0_20 = arith.constant 0 : index
      %c0_21 = arith.constant 0 : index
      %29 = vector.load %arg6[%c0_20, %c0_21] : memref<1x128xf32, #tpu.memory_space<vmem>>, vector<1x128xf32>
      %30 = vector.broadcast %29 : vector<1x128xf32> to vector<8x128xf32>
      %31 = arith.addf %28, %30 : vector<8x128xf32>
      %c0_22 = arith.constant 0 : index
      %c0_23 = arith.constant 0 : index
      %32 = vector.load %arg7[%c0_22, %c0_23] : memref<8x128xf32, #tpu.memory_space<vmem>>, vector<8x128xf32>
      tpu.vector_store %arg7[%c0_22, %c0_23], %31 {strides = array<i32>} : memref<8x128xf32, #tpu.memory_space<vmem>>, vector<8x128xf32>,
    } else {
    }
    return
  }
  func.func @transform_0(%arg0: i32, %arg1: i32) -> (i32, i32) {
    %c0_i32 = arith.constant 0 : i32
    %c0_i32_0 = arith.constant 0 : i32
    return %arg0, %c0_i32 : i32, i32
  }
  func.func @transform_1(%arg0: i32, %arg1: i32) -> (i32, i32) {
    %c0_i32 = arith.constant 0 : i32
    %c0_i32_0 = arith.constant 0 : i32
    return %c0_i32, %arg1 : i32, i32
  }
  func.func @transform_2(%arg0: i32, %arg1: i32) -> (i32, i32) {
    %c0_i32 = arith.constant 0 : i32
    %c0_i32_0 = arith.constant 0 : i32
    return %c0_i32, %arg1 : i32, i32
  }
  func.func @transform_3(%arg0: i32, %arg1: i32) -> (i32, i32) {
    %c0_i32 = arith.constant 0 : i32
    %c0_i32_0 = arith.constant 0 : i32
    return %arg1, %c0_i32 : i32, i32
  }
  func.func @transform_4(%arg0: i32, %arg1: i32) -> (i32, i32) {
    %c0_i32 = arith.constant 0 : i32
    %c0_i32_0 = arith.constant 0 : i32
    %c0_i32_1 = arith.constant 0 : i32
    return %c0_i32, %c0_i32_0 : i32, i32
  }
  func.func @transform_5(%arg0: i32, %arg1: i32) -> (i32, i32) {
    %c0_i32 = arith.constant 0 : i32
    %c0_i32_0 = arith.constant 0 : i32
    return %arg0, %c0_i32 : i32, i32
  }
}

</mosaic_0001>

<bundles_post_ra>
// kernel: tpu_custom_call.1
= control target key start
LH: loop header
LB: loop body
LE: loop exit
PB: predicated region body
PF: predicated region fallthrough
CT: control target
= control target key end

     0   :  { %s1291_s0 = inlined_call_operand.hbm [shape: f32[16,128], index: 0, kind: input, shape index: {}]   ;;  %s1292_s1 = inlined_call_operand.hbm [shape: f32[128,128], index: 1, kind: input, shape index: {}]   ;;  %s1293_s2 = inlined_call_operand.vmem [shape: f32[1,128], index: 2, kind: input, shape index: {}]   ;;  %s1294_s3 = inlined_call_operand.hbm [shape: f32[128,128], index: 3, kind: input, shape index: {}]   ;;  %s1295_s4 = inlined_call_operand.vmem [shape: f32[1,128], index: 4, kind: input, shape index: {}]   ;;  %s1296_s5 = inlined_call_operand.hbm [shape: f32[16,128], index: 5, kind: output, shape index: {}]  }
   0x1   :  { %1300 = sst [smem:[#allocation13_spill]] %s1292_s1 }
   0x2   :  { %10 = vsyncpa [#allocation4], 0 }
   0x3   :  { %12 = vsyncpa [#allocation4 + $0x1], 0 }
   0x4   :  { %13 = vsyncpa [#allocation7], 0 }
   0x5   :  { %14 = vsyncpa [#allocation5], 0 }
   0x6   :  { %16 = vsyncpa [#allocation5 + $0x1], 0  ;;  %s1064_s18 = smov 0   ;;  %s1066_s19 = smov 0  }
   0x7   :  { %s1068_s20 = smov 0   ;;  %s1070_s21 = smov 0  }
   0x8   :  { %s1072_s22 = smov 0   ;;  %s1074_s23 = smov 0  }
   0x9 LB: > { %s647_s24 = sadd.s32 4294967295, %s1024_s23   ;;  %s648_s25 = sadd.s32 4294967294, %s1024_s23   ;;  %s1024_s23 = sphi %s1074_s23, %s22_s23   ;;  %s1020_s22 = sphi %s1072_s22, %s1318_s22   ;;  %s1016_s21 = sphi %s1070_s21, %s1317_s21   ;;  %s1012_s20 = sphi %s1068_s20, %s1316_s20   ;;  %s1008_s19 = sphi %s1066_s19, %s1315_s19   ;;  %s1004_s18 = sphi %s1064_s18, %s1314_s18  }
   0xa   : > { %p54_p0 = scmp.ne.s32.totalorder %s1008_s19, %s1004_s18  ;;  %p1098_p1 = scmp.eq.s32.totalorder %s647_s24, 0 }
   0xb   : > { %p1102_p2 = scmp.eq.s32.totalorder %s647_s24, 1  ;;  %p183_p3 = scmp.eq.s32.totalorder %s648_s25, 1 }
   0xc   : > { %s1301_s26 = scalar_select %p1098_p1, 1, 0 }
   0xd   : > { %p1108_p4 = por %p1098_p1, %p54_p0  ;;  %p649_p5 = scmp.ge.s32.totalorder %s1024_s23, 1 }
   0xe   : > { %p1113_p6 = por %p183_p3, %p54_p0  ;;  %p190_p7 = scmp.lt.s32.totalorder %s1024_s23, 3 }
   0xf   : > { %s1303_s28 = scalar_select %p1108_p4, 1, 0 }
  0x10   : > { %s1304_s29 = scalar_select %p1113_p6, 1, 0 }
  0x11   : > { %p1118_p8 = pnand %p649_p5, %p190_p7  ;;  %s1026_s6 = smov [#allocation6]  }
  0x12   : > { %s204_s7 = sshll.u32 %s1026_s6, 4  ;;  %s1027_s9 = smov [#allocation8]   ;;  %s205_s7 = int_to_ptr.vmem [resolvable:$true] %s204_s7 }
  0x13   : > { %p783_p9 = pneg %p1118_p8  ;;  %s226_s10 = sshll.u32 %s1027_s9, 4  ;;  %s227_s10 = int_to_ptr.vmem [resolvable:$true] %s226_s10 }
  0x14   : > { %s871_s11 = scalar_lea.vmem %s205_s7, 2048  ;;  %p879_p5 = scmp.lt.s32.totalorder %s205_s7, %s205_s7 }
  0x15   : > { %p1127_p11 = pnand %p783_p9, %p1098_p1  ;;  %p872_p13 = scmp.ne.s32.totalorder %s205_s7, %s871_s11 }
  0x16   : > { %p880_p7 = scmp.lt.s32.totalorder %s871_s11, %s871_s11 }
  0x17   : > { %p862_p12 = pneg %p1127_p11 }
  0x18   : > { %p881_p10 = por %p880_p7, %p879_p5 }
  0x19   : > { %p874_p0 = pnand %p872_p13, %p862_p12 }
  0x1b   : > { %p875_p3 = pneg %p874_p0 }
  0x1d   : > { %p882_p9 = pnand %p881_p10, %p875_p3 }
  0x1f   : > { %885 = shalt.err (!%p882_p9)
}
  0x20   : > { %s1028_s12 = smov 128   ;;  %s1029_s13 = smov 8  }
  0x21   : > { %s1307_s1 = sld [smem:[#allocation13_spill]]  ;;  %s897_s16 = scalar_lea.vmem %s227_s10, 2048 }
  0x22   : > { %p898_p6 = scmp.ne.s32.totalorder %s227_s10, %s897_s16  ;;  %p905_p1 = scmp.lt.s32.totalorder %s227_s10, %s227_s10 }
  0x23   : > { %p906_p4 = scmp.lt.s32.totalorder %s897_s16, %s897_s16 }
  0x24   : > { %p900_p13 = pnand %p898_p6, %p862_p12 }
  0x25   : > { %p907_p5 = por %p906_p4, %p905_p1 }
  0x26   : > { %p901_p0 = pneg %p900_p13 }
  0x27   : > { %786 = dma.hbm_to_vmem [thread:$0]  (!%p1127_p11), %s1307_s1, 2048, %s205_s7, [#allocation7], %s1028_s12, %s1028_s12, %s1029_s13  }
  0x28   : > { %p908_p10 = pnand %p907_p5, %p901_p0 }
  0x2a   : > { %911 = shalt.err (!%p908_p10)
}
  0x2b   : > { %789 = dma.hbm_to_vmem [thread:$0]  (!%p1127_p11), %s1294_s3, 2048, %s227_s10, [#allocation7], %s1028_s12, %s1028_s12, %s1029_s13  }
  0x2c   : > { %s34_s25 = sadd.s32 1, %s1020_s22  ;;  %s41_s6 = sadd.s32 1, %s1012_s20 }
  0x2d   : > { %p36_p1 = scmp.ge.s32.totalorder %s34_s25, 2  ;;  %p48_p4 = scmp.ne.s32.totalorder %s1012_s20, %s1008_s19 }
  0x2e   : > { %p49_p6 = scmp.eq.s32.totalorder %s1024_s23, 0  ;;  %p800_p12 = scmp.lt.s32.totalorder %s1024_s23, 2 }
  0x2f   : > { %s1320_s25 = smov (%p36_p1, %s34_s25), 0  ;;  %p1159_p7 = por %p1102_p2, %p48_p4 }
  0x30   : > { %p50_p3 = por %p49_p6, %p48_p4  ;;  %s38_s8 = ssub.s32 %s1020_s22, %s1320_s25 }
  0x31   : > { %s243_s9 = sand.u32 1, %s1012_s20   ;;  %p39_p9 = scmp.eq.s32.totalorder %s38_s8, 0 }
  0x32   : > { %s654_s10 = sshll.u32 %s243_s9, 3  ;;  %s655_s11 = sshll.u32 %s1020_s22, 7 }
  0x33   : > { %s1168_s12 = scalar_select %p39_p9, %s1012_s20, %s41_s6  }
  0x34   : > { %s252_s15 = scalar_lea.hbm %s1291_s0, %s655_s11  ;;  %s247_s16 = scalar_lea.vmem [#allocation3], %s654_s10 }
  0x35   : > { %s254_s17 = sshll.u32 %s247_s16, 4  ;;  %p1175_p11 = pnand %p800_p12, %p50_p3  ;;  %s255_s17 = int_to_ptr.vmem [resolvable:$true] %s254_s17 }
  0x36   : > { %s244_s24 = scalar_lea.sflag [#allocation4], %s243_s9  ;;  %s925_s8 = scalar_lea.vmem %s255_s17, 128 }
  0x37   : > { %p914_p2 = pneg %p1175_p11  ;;  %p926_p13 = scmp.ne.s32.totalorder %s255_s17, %s925_s8 }
  0x38   : > { %s1030_s6 = smov [#allocation3]  }
  0x39   : > { %p928_p0 = pnand %p926_p13, %p914_p2  ;;  %s930_s1 = sshll.u32 %s1030_s6, 4  ;;  %s931_s1 = int_to_ptr.vmem [resolvable:$false] %s930_s1 }
  0x3a   : > { %s932_s11 = scalar_lea.vmem %s931_s1, 256  ;;  %p933_p10 = scmp.lt.s32.totalorder %s255_s17, %s931_s1 }
  0x3b   : > { %p929_p5 = pneg %p928_p0  ;;  %p934_p1 = scmp.lt.s32.totalorder %s932_s11, %s925_s8 }
  0x3d   : > { %p935_p4 = por %p934_p1, %p933_p10 }
  0x3f   : > { %p936_p6 = pnand %p935_p4, %p929_p5 }
  0x41   : > { %939 = shalt.err (!%p936_p6)
}
  0x42   : > { %793 = dma.hbm_to_vmem [thread:$0]  (!%p1175_p11), %s252_s15, 128, %s255_s17, %s244_s24  }
  0x43   : > { %263 = sbr.rel (%p1118_p8) target bundleno = 539 (0x21b), region = 40  ;;  %s1186_s9 = sand.u32 (!%p1118_p8), 1, %s1008_s19  }
  0x44   : > { %s657_s10 = sshll.u32 (!%p1118_p8), %s1186_s9, 3  ;;  %s266_s13 = scalar_lea.sflag (!%p1118_p8), [#allocation4], %s1186_s9 }
  0x45   : > { %s1192_s1 = scalar_lea.vmem (!%p1118_p8), [#allocation3], %s657_s10  ;;  %p1310_p12 = scmp.ne.s32.totalorder (!%p1118_p8), %s1303_s28, 0 }
  0x48   : > { %991 = dma.done.wait (%p1310_p12), %s266_s13, 128  }
  0x49   : > { %993 = vsyncadd (%p1310_p12), %s266_s13, 4294967168  ;;  %p1311_p3 = scmp.ne.s32.totalorder %s1301_s26, 0 }
  0x4b   : > { %995 = dma.done.wait (%p1311_p3), [#allocation7], 4096  }
  0x4c   : > { %997 = vsyncadd (%p1311_p3), [#allocation7], 4294963200  ;;  %v1031_v0 = vmov 0.0   ;;  %vm1032_vm0 = vmmov 0   ;;  %v332_v1 = vld [vmem:[#allocation6 + $0x78] sm:$0xff]  ;;  %v331_v2 = vld [vmem:[#allocation6 + $0x70] sm:$0xff] }
  0x4d   : > { %701 = vmatprep.subr.mxu0 %v1031_v0  ;;  %733 = vmatprep.mubr.msk.f32.mxu0 %vm1032_vm0, %v1031_v0  ;;  %v330_v3 = vld [vmem:[#allocation6 + $0x68] sm:$0xff]  ;;  %v329_v4 = vld [vmem:[#allocation6 + $0x60] sm:$0xff]  ;;  %v434_v5 = vld [vmem:[#allocation8 + $0x78] sm:$0xff]  ;;  %s664_s15 = sshll.u32 %s1016_s21, 7  ;;  %s306_s16 = scalar_lea.vmem [#allocation9], %s657_s10 }
  0x4e   : > { %736 = vmatprep.subr.mxu1 %v1031_v0  ;;  %768 = vmatprep.mubr.msk.f32.mxu1 %vm1032_vm0, %v1031_v0  ;;  %v328_v6 = vld [vmem:[#allocation6 + $0x58] sm:$0xff]  ;;  %v327_v7 = vld [vmem:[#allocation6 + $0x50] sm:$0xff]  ;;  %v326_v8 = vld [vmem:[#allocation6 + $0x48] sm:$0xff]  ;;  %s534_s17 = sshll.u32 %s306_s16, 4  ;;  %s1249_s8 = scalar_lea.hbm %s1296_s5, %s664_s15  ;;  %s535_s17 = int_to_ptr.vmem [resolvable:$true] %s534_s17 }
  0x4f   : > { %702 = vmatpush3.msra.mxu0 %v332_v1  ;;  %737 = vmatpush3.msra.mxu1 %v434_v5  ;;  %v325_v9 = vld [vmem:[#allocation6 + $0x40] sm:$0xff]  ;;  %v324_v10 = vld [vmem:[#allocation6 + $0x38] sm:$0xff]  ;;  %v323_v11 = vld [vmem:[#allocation6 + $0x30] sm:$0xff]  ;;  %s521_s6 = scalar_lea.sflag [#allocation5], %s1186_s9  ;;  %s940_s11 = scalar_lea.vmem %s535_s17, 128 }
  0x50   : > { %703 = vmatprep.subr.mxu0 %v1031_v0  ;;  %738 = vmatprep.subr.mxu1 %v1031_v0  ;;  %v322_v12 = vld [vmem:[#allocation6 + $0x28] sm:$0xff]  ;;  %v321_v13 = vld [vmem:[#allocation6 + $0x20] sm:$0xff]  ;;  %v320_v14 = vld [vmem:[#allocation6 + $0x18] sm:$0xff]  ;;  %p941_p8 = scmp.ne.s32.totalorder %s535_s17, %s940_s11  ;;  %s1033_s21 = smov [#allocation9]  }
  0x51   : > { %704 = vmatpush3.msra.mxu0 %v331_v2  ;;  %v319_v15 = vld [vmem:[#allocation6 + $0x10] sm:$0xff]  ;;  %v318_v16 = vld [vmem:[#allocation6 + $0x8] sm:$0xff]  ;;  %v317_v17 = vld [vmem:[#allocation6] sm:$0xff]  ;;  %s944_s13 = sshll.u32 %s1033_s21, 4  ;;  %s945_s13 = int_to_ptr.vmem [resolvable:$false] %s944_s13 }
  0x52   : > { %705 = vmatprep.subr.mxu0 %v1031_v0  ;;  %v316_v18 = vld [vmem:[%s1192_s1] sm:$0xff]  ;;  %v432_v20 = vld [vmem:[#allocation8 + $0x68] sm:$0xff]  ;;  %v431_v21 = vld [vmem:[#allocation8 + $0x60] sm:$0xff]  ;;  %p942_p9 = pnand %p941_p8, %p1159_p7  ;;  %s946_s10 = scalar_lea.vmem %s945_s13, 256 }
  0x53   : > { %706 = vmatpush3.msra.mxu0 %v330_v3  ;;  %v433_v19 = vld [vmem:[#allocation8 + $0x70] sm:$0xff]  ;;  %v430_v22 = vld [vmem:[#allocation8 + $0x58] sm:$0xff]  ;;  %v428_v24 = vld [vmem:[#allocation8 + $0x48] sm:$0xff]  ;;  %p947_p2 = scmp.lt.s32.totalorder %s535_s17, %s945_s13  ;;  %p948_p13 = scmp.lt.s32.totalorder %s946_s10, %s940_s11 }
  0x54   : > { %707 = vmatprep.subr.mxu0 %v1031_v0  ;;  %739 = vmatpush3.msra.mxu1 %v433_v19  ;;  %v429_v23 = vld [vmem:[#allocation8 + $0x50] sm:$0xff]  ;;  %v427_v25 = vld [vmem:[#allocation8 + $0x40] sm:$0xff]  ;;  %v426_v26 = vld [vmem:[#allocation8 + $0x38] sm:$0xff]  ;;  %p943_p11 = pneg %p942_p9 }
  0x55   : > { %708 = vmatpush3.msra.mxu0 %v329_v4  ;;  %740 = vmatprep.subr.mxu1 %v1031_v0  ;;  %v425_v27 = vld [vmem:[#allocation8 + $0x30] sm:$0xff]  ;;  %v424_v28 = vld [vmem:[#allocation8 + $0x28] sm:$0xff]  ;;  %v423_v29 = vld [vmem:[#allocation8 + $0x20] sm:$0xff]  ;;  %p949_p0 = por %p948_p13, %p947_p2 }
  0x56   : > { %709 = vmatprep.subr.mxu0 %v1031_v0  ;;  %741 = vmatpush3.msra.mxu1 %v432_v20  ;;  %v422_v30 = vld [vmem:[#allocation8 + $0x18] sm:$0xff]  ;;  %v421_v31 = vld [vmem:[#allocation8 + $0x10] sm:$0xff]  ;;  %v420_v32 = vld [vmem:[#allocation8 + $0x8] sm:$0xff] }
  0x57   : > { %710 = vmatpush3.msra.mxu0 %v328_v6  ;;  %742 = vmatprep.subr.mxu1 %v1031_v0  ;;  %v419_v33 = vld [vmem:[#allocation8] sm:$0xff]  ;;  %v661_v34 = vld [vmem:[%s1293_s2] ss:$0 sm:$0xff]  ;;  %p950_p5 = pnand %p949_p0, %p943_p11 }
  0x58   : > { %711 = vmatprep.subr.mxu0 %v1031_v0  ;;  %743 = vmatpush3.msra.mxu1 %v431_v21  ;;  %v662_v46 = vld [vmem:[%s1295_s4] ss:$0 sm:$0xff] }
  0x59   : > { %712 = vmatpush3.msra.mxu0 %v327_v7  ;;  %744 = vmatprep.subr.mxu1 %v1031_v0 }
  0x5a   : > { %713 = vmatprep.subr.mxu0 %v1031_v0  ;;  %745 = vmatpush3.msra.mxu1 %v430_v22 }
  0x5b   : > { %714 = vmatpush3.msra.mxu0 %v326_v8  ;;  %746 = vmatprep.subr.mxu1 %v1031_v0 }
  0x5c   : > { %715 = vmatprep.subr.mxu0 %v1031_v0  ;;  %747 = vmatpush3.msra.mxu1 %v429_v23 }
  0x5d   : > { %716 = vmatpush3.msra.mxu0 %v325_v9  ;;  %748 = vmatprep.subr.mxu1 %v1031_v0 }
  0x5e   : > { %717 = vmatprep.subr.mxu0 %v1031_v0  ;;  %749 = vmatpush3.msra.mxu1 %v428_v24 }
  0x5f   : > { %718 = vmatpush3.msra.mxu0 %v324_v10  ;;  %750 = vmatprep.subr.mxu1 %v1031_v0 }
  0x60   : > { %719 = vmatprep.subr.mxu0 %v1031_v0  ;;  %751 = vmatpush3.msra.mxu1 %v427_v25 }
  0x61   : > { %720 = vmatpush3.msra.mxu0 %v323_v11  ;;  %752 = vmatprep.subr.mxu1 %v1031_v0 }
  0x62   : > { %721 = vmatprep.subr.mxu0 %v1031_v0  ;;  %753 = vmatpush3.msra.mxu1 %v426_v26 }
  0x63   : > { %722 = vmatpush3.msra.mxu0 %v322_v12  ;;  %754 = vmatprep.subr.mxu1 %v1031_v0 }
  0x64   : > { %723 = vmatprep.subr.mxu0 %v1031_v0  ;;  %755 = vmatpush3.msra.mxu1 %v425_v27 }
  0x65   : > { %724 = vmatpush3.msra.mxu0 %v321_v13  ;;  %756 = vmatprep.subr.mxu1 %v1031_v0 }
  0x66   : > { %725 = vmatprep.subr.mxu0 %v1031_v0  ;;  %757 = vmatpush3.msra.mxu1 %v424_v28 }
  0x67   : > { %726 = vmatpush3.msra.mxu0 %v320_v14  ;;  %758 = vmatprep.subr.mxu1 %v1031_v0 }
  0x68   : > { %727 = vmatprep.subr.mxu0 %v1031_v0  ;;  %759 = vmatpush3.msra.mxu1 %v423_v29 }
  0x69   : > { %728 = vmatpush3.msra.mxu0 %v319_v15  ;;  %760 = vmatprep.subr.mxu1 %v1031_v0 }
  0x6a   : > { %729 = vmatprep.subr.mxu0 %v1031_v0  ;;  %761 = vmatpush3.msra.mxu1 %v422_v30 }
  0x6b   : > { %730 = vmatpush3.msra.mxu0 %v318_v16  ;;  %762 = vmatprep.subr.mxu1 %v1031_v0 }
  0x6c   : > { %731 = vmatprep.subr.mxu0 %v1031_v0  ;;  %763 = vmatpush3.msra.mxu1 %v421_v31 }
  0x6d   : > { %732 = vmatpush3.msra.mxu0 %v317_v17  ;;  %764 = vmatprep.subr.mxu1 %v1031_v0 }
  0x6e   : > { %734 = vmatmul.mubr.f32.vlgmr.msra.gmra.mxu0 %v316_v18  ;;  %765 = vmatpush3.msra.mxu1 %v420_v32 }
  0x6f   : > { %766 = vmatprep.subr.mxu1 %v1031_v0 }
  0x70   : > { %767 = vmatpush3.msra.mxu1 %v419_v33 }
 0x12e   : > { %v406_v35 = vpop.f32.mrf.mxu0 }
 0x12f   : > { %v407_v36 = vadd.f32 %v661_v34, %v406_v35 }
 0x130   : > { %v735_v37 = vpop.f32.mrf.mxu0 }
 0x131   : > { %v410_v38 = vmul.f32 %v407_v36, %v407_v36  ;;  %v415_v42 = vmul.f32 0.5, %v407_v36 }
 0x133   : > { %v411_v39 = vmul.f32 0.035677407, %v410_v38 }
 0x135   : > { %v412_v40 = vadd.f32 0.7978846, %v411_v39 }
 0x137   : > { %v413_v41 = vmul.f32 %v412_v40, %v407_v36 }
 0x139   : > { %858 = vtanh.f32 %v413_v41 }
 0x146   : > { %v859_v43 = vpop.eup %858 }
 0x147   : > { %v416_v44 = vmul.f32 %v859_v43, %v415_v42 }
 0x149   : > { %v417_v45 = vadd.f32 %v416_v44, %v415_v42 }
 0x14b   : > { %769 = vmatmul.mubr.f32.vlgmr.msra.gmra.mxu1 %v417_v45 }
 0x20b   : > { %v501_v47 = vpop.f32.mrf.mxu1 }
 0x20c   : > { %v518_v48 = vadd.f32 %v662_v46, %v501_v47 }
 0x20d   : > { %v770_v49 = vpop.f32.mrf.mxu1 }
 0x20e   : > { %519 = vst [vmem:[%s306_s16] sm:$0xff] %v518_v48 }
 0x20f   : > { %953 = shalt.err (!%p950_p5)
}
 0x210   : > { %s954_s1 = scalar_lea.hbm %s1249_s8, 128  ;;  %s958_s28 = scalar_lea.hbm %s1296_s5, 256 }
 0x211   : > { %p955_p10 = scmp.ne.s32.totalorder %s1249_s8, %s954_s1  ;;  %p959_p6 = scmp.lt.s32.totalorder %s1249_s8, %s1296_s5 }
 0x212   : > { %p960_p12 = scmp.lt.s32.totalorder %s958_s28, %s954_s1 }
 0x213   : > { %p956_p1 = pnand %p955_p10, %p1159_p7 }
 0x214   : > { %p961_p3 = por %p960_p12, %p959_p6 }
 0x215   : > { %p957_p4 = pneg %p956_p1 }
 0x217   : > { %p962_p8 = pnand %p961_p3, %p957_p4 }
 0x219   : > { %965 = shalt.err (!%p962_p8)
}
 0x21a   : > { %781 = dma.vmem_to_hbm [thread:$0]  (%p1159_p7), %s535_s17, 128, %s1249_s8, %s521_s6  }
 0x21b PF: > { %s546_s15 = sand.u32 1, %s1004_s18   ;;  %p1312_p9 = scmp.ne.s32.totalorder %s1304_s29, 0 }
 0x21c   : > { %p1313_p11 = scmp.ge.s32.totalorder %s1024_s23, 2  ;;  %s547_s16 = scalar_lea.sflag [#allocation5], %s546_s15 }
 0x21e   : > { %p795_p2 = pnand %p1313_p11, %p1312_p9 }
 0x220   : > { %p796_p13 = pneg %p795_p2 }
 0x222   : > { %999 = dma.done.wait (%p796_p13), %s547_s16, 128  }
 0x223   : > { %1001 = vsyncadd (%p796_p13), %s547_s16, 4294967168  ;;  %s22_s23 = sadd.s32 1, %s1024_s23   ;;  %s1314_s18 = smov %s1008_s19 }
 0x224   : > { %p19_p0 = scmp.ge.s32.totalorder %s22_s23, 4   ;;  %s1315_s19 = smov %s1012_s20 }
 0x225   : > { %s1316_s20 = smov %s1168_s12  ;;  %s1317_s21 = smov %s1020_s22 }
 0x226   : > { %s1318_s22 = smov %s1320_s25  ;;  %21 = sbr.rel (!%p19_p0) target bundleno = 9 (0x9), region = 106 }
 0x22b   :  { %552 = vsyncpa [#allocation4], 1 }
 0x22c   :  { %554 = vsyncpa [#allocation4 + $0x1], 1 }
 0x22d   :  { %555 = vsyncpa [#allocation7], 1 }
 0x22e   :  { %556 = vsyncpa [#allocation5], 1 }
 0x22f   :  { %558 = vsyncpa [#allocation5 + $0x1], 1 }

</bundles_post_ra>
